<compile_context>
chip_gen: v5e
topology: v5e:2x2
jax: 0.10.0
libtpu: 0.0.40
codegen_flags: <defaults>
</compile_context>

<pallas_src>
from functools import partial

import jax
import jax.numpy as jnp
from jax import lax
from jax.experimental import pallas as pl
from jax.experimental.pallas import tpu as pltpu


def _vmem_spec():
    return pl.BlockSpec(memory_space=pltpu.MemorySpace.VMEM)


@partial(jax.jit, static_argnames=("num_actions",))
def policy_act(observations, states, masks, w_slab, b_slab, *, num_actions):
    """Fused act() hot path.

    Returns (h_new, value, action_log_probs, probs, entropy_rows, action)."""
    B, H = states.shape
    OBS = observations.shape[1]
    A = num_actions
    assert A + 4 <= H  # packed result lanes [0 .. A+3] fit in the H-wide half

    # Static offsets into the packed parameter slabs (all sublane/lane aligned).
    r_rz, r_n, r_p, r_head = 0, 2 * H, 3 * H, 3 * H + OBS
    c_p, c_rz, c_in, c_hn, c_head = 0, H, 3 * H, 4 * H, 5 * H

    def kernel(obs_ref, h_ref, m_ref, w_ref, b_ref, out_ref):
        f32 = jnp.float32

        def w(r0, r1, c0, c1):          # bf16 weights -> f32 (DMA'd at half size)
            return w_ref[r0:r1, c0:c1].astype(f32)

        def b(c0, c1):
            return b_ref[:, c0:c1]

        # ---- perception stub: linear + relu (fused) ----
        x = jnp.maximum(
            jnp.dot(obs_ref[...], w(r_p, r_p + OBS, 0, H),
                    preferred_element_type=f32) + b(c_p, c_p + H),
            0.0,
        )

        hm = h_ref[...] * m_ref[...]               # states * masks, (B, H)

        # ---- GRUCell ----
        xh = jnp.concatenate([x, hm], axis=-1)     # (B, 2H)
        rz = jax.nn.sigmoid(
            jnp.dot(xh, w(r_rz, r_rz + 2 * H, 0, 2 * H),
                    preferred_element_type=f32) + b(c_rz, c_rz + 2 * H))
        r = rz[:, :H]
        z = rz[:, H:]
        gi_n = jnp.dot(x, w(r_n, r_n + H, 0, H),
                       preferred_element_type=f32) + b(c_in, c_in + H)
        gh_n = jnp.dot(hm, w(r_n, r_n + H, H, 2 * H),
                       preferred_element_type=f32) + b(c_hn, c_hn + H)
        n = jnp.tanh(gi_n + r * gh_n)              # b_hn inside the r-mult
        h_new = (1.0 - z) * n + z * hm

        # ---- fused critic + actor head, padded to a full 128-lane vreg ----
        # lane 0 = value, lanes 1..A = logits, lanes A+1.. = exactly 0
        head = jnp.dot(h_new, w(r_head, r_head + H, 0, H),
                       preferred_element_type=f32) + b(c_head, c_head + H)

        lane = lax.broadcasted_iota(jnp.int32, head.shape, 1)
        is_logit = (lane >= 1) & (lane <= A)

        # masked softmax / log-softmax over the logit lanes
        mx = jnp.max(jnp.where(is_logit, head, -jnp.inf), axis=-1, keepdims=True)
        shifted = head - mx
        ex = jnp.where(is_logit, jnp.exp(shifted), 0.0)
        denom = jnp.sum(ex, axis=-1, keepdims=True)
        probs = ex / denom                          # 0 outside logit lanes
        logp = shifted - jnp.log(denom)
        ent = -jnp.sum(jnp.where(is_logit, probs * logp, 0.0),
                       axis=-1, keepdims=True)

        # deterministic action = argmax (first maximal index on ties)
        is_max = is_logit & (head == mx)
        act_lane = jnp.min(jnp.where(is_max, lane, H), axis=-1, keepdims=True)
        action = act_lane - 1                       # (B, 1) int32, in [0, A)
        alp = jnp.sum(jnp.where(lane == act_lane, logp, 0.0),
                      axis=-1, keepdims=True)

        # ---- build the whole output slab in registers; ONE lane-dense store ----
        # second-half lane layout: 0=value, 1..A=probs, A+1=logp(a),
        # A+2=entropy, A+3=action (exact small-int float value), rest 0.
        packed = jnp.where(lane == 0, head,
                 jnp.where(is_logit, probs,
                 jnp.where(lane == A + 1, alp,
                 jnp.where(lane == A + 2, ent,
                 jnp.where(lane == A + 3, action.astype(f32), 0.0)))))
        out_ref[...] = jnp.concatenate([h_new, packed], axis=-1)

    slab = pl.pallas_call(
        kernel,
        out_shape=jax.ShapeDtypeStruct((B, 2 * H), jnp.float32),
        in_specs=[_vmem_spec()] * 5,
        out_specs=_vmem_spec(),
    )(observations, states, masks, w_slab, b_slab)

    h_new = slab[:, :H]
    pk = slab[:, H:]
    value = pk[:, 0:1]
    probs = pk[:, 1:1 + A]
    alp = pk[:, A + 1:A + 2]
    ent_rows = pk[:, A + 2:A + 3]
    action = pk[:, A + 3:A + 4].astype(jnp.int32)
    return h_new, value, alp, probs, ent_rows, action


# ----------------------------------------------------------------------------
# Wrapper mirroring RecurrentPolicyWithBase.act()
# ----------------------------------------------------------------------------
class RecurrentPolicyWithBase:
    def __init__(self, key, obs_dim, internal_state_size=128, num_actions=4):
        H, A, OBS = internal_state_size, num_actions, obs_dim
        assert OBS % 8 == 0 and H % 128 == 0
        self.num_actions = A
        ks = jax.random.split(key, 8)
        s = 0.05

        # TODO(synk): perception_unit is an external dependency of the module;
        # modelled as a single linear+relu stub (fused into the kernel).
        wp = s * jax.random.normal(ks[0], (OBS, H), jnp.float32)
        bp = jnp.zeros((1, H), jnp.float32)

        # Raw GRU / head params (PyTorch GRUCell gate order r, z, n), transposed.
        wih = s * jax.random.normal(ks[1], (H, 3 * H), jnp.float32)
        whh = s * jax.random.normal(ks[2], (H, 3 * H), jnp.float32)
        bih = s * jax.random.normal(ks[3], (1, 3 * H), jnp.float32)
        bhh = s * jax.random.normal(ks[4], (1, 3 * H), jnp.float32)
        wc = s * jax.random.normal(ks[5], (H, 1), jnp.float32)      # critic_linear
        bc = jnp.zeros((1, 1), jnp.float32)
        wa = 0.01 * jax.random.normal(ks[6], (H, A), jnp.float32)   # Categorical head
        ba = jnp.zeros((1, A), jnp.float32)

        self.raw = dict(wp=wp, bp=bp, wih=wih, whh=whh, bih=bih, bhh=bhh,
                        wc=wc, bc=bc, wa=wa, ba=ba)

        # ---- host-side packing (init-time only, off the hot path) ----
        # Weight slab, bf16, rows:
        #   [0 , 2H)       [wih_rz ; whh_rz]                    (2H , 2H)
        #   [2H, 3H)       [wih_n | whh_n]                      (H  , 2H)
        #   [3H, 3H+OBS)   perception weight, lane-padded       (OBS, 2H)
        #   [3H+OBS, +H)   [wc | wa | 0...], lane-padded        (H  , 2H)
        w_rz = jnp.concatenate([wih[:, :2 * H], whh[:, :2 * H]], axis=0)
        w_n = jnp.concatenate([wih[:, 2 * H:], whh[:, 2 * H:]], axis=1)
        wp_pad = jnp.pad(wp, ((0, 0), (0, H)))
        w_head = jnp.concatenate([wc, wa], axis=1)
        w_head_pad = jnp.pad(w_head, ((0, 0), (0, 2 * H - (1 + A))))
        self.w_slab = jnp.concatenate(
            [w_rz, w_n, wp_pad, w_head_pad], axis=0).astype(jnp.bfloat16)

        # Bias slab, f32, one (1, 6H) row:
        #   [0,H) bp | [H,3H) bih_rz+bhh_rz | [3H,4H) bih_n | [4H,5H) bhh_n
        #   | [5H,6H) [bc | ba | 0...]
        b_rz = bih[:, :2 * H] + bhh[:, :2 * H]
        b_head = jnp.concatenate([bc, ba], axis=1)
        b_head_pad = jnp.pad(b_head, ((0, 0), (0, H - (1 + A))))
        self.b_slab = jnp.concatenate(
            [bp, b_rz, bih[:, 2 * H:], bhh[:, 2 * H:], b_head_pad], axis=1)

        # Reference weights = what the kernel effectively uses (bf16-rounded).
        rnd = lambda a: a.astype(jnp.bfloat16).astype(jnp.float32)
        self.raw_ref = dict(self.raw, wp=rnd(wp), wih=rnd(wih), whh=rnd(whh),
                            wc=rnd(wc), wa=rnd(wa))

    def act(self, observations, states, masks, deterministic=True):
        # TODO(synk): non-deterministic path (dist.sample()) needs RNG plumbing;
        # the deterministic (dist.mode()/argmax) branch is implemented in-kernel.
        pre_embedding = observations
        h_new, value, action_log_probs, probs, ent_rows, action = policy_act(
            observations, states, masks, self.w_slab, self.b_slab,
            num_actions=self.num_actions)
        self.probs = probs
        self.entropy = jnp.mean(ent_rows)
        self.perplexity = jnp.exp(self.entropy)
        return value, h_new, action, action_log_probs, pre_embedding


# ----------------------------------------------------------------------------
def _reference(raw, observations, states, masks):
    """Pure-JAX reference (same bf16-rounded weights, f32 math)."""
    dot = partial(jnp.dot, precision=lax.Precision.HIGHEST)
    x = jax.nn.relu(dot(observations, raw["wp"]) + raw["bp"])
    H = x.shape[-1]
    h = states * masks
    gi = dot(x, raw["wih"]) + raw["bih"]
    gh = dot(h, raw["whh"]) + raw["bhh"]
    r = jax.nn.sigmoid(gi[:, :H] + gh[:, :H])
    z = jax.nn.sigmoid(gi[:, H:2 * H] + gh[:, H:2 * H])
    n = jnp.tanh(gi[:, 2 * H:] + r * gh[:, 2 * H:])
    h_new = (1.0 - z) * n + z * h
    value = dot(h_new, raw["wc"]) + raw["bc"]
    logits = dot(h_new, raw["wa"]) + raw["ba"]
    logp = jax.nn.log_softmax(logits, axis=-1)
    probs = jax.nn.softmax(logits, axis=-1)
    action = jnp.argmax(logits, axis=-1, keepdims=True)
    alp = jnp.take_along_axis(logp, action, axis=-1)
    ent = -jnp.sum(probs * logp, axis=-1, keepdims=True)
    return value, h_new, action.astype(jnp.int32), alp, probs, jnp.mean(ent)


if __name__ == "__main__":
    B, OBS, H, A = 8, 32, 128, 4

    key = jax.random.PRNGKey(0)
    k_obs, k_state, k_mask, k_params = jax.random.split(key, 4)

    observations = jax.random.normal(k_obs, (B, OBS), jnp.float32)
    states = jax.random.normal(k_state, (B, H), jnp.float32)
    masks = (jax.random.uniform(k_mask, (B, 1)) > 0.3).astype(jnp.float32)

    policy = RecurrentPolicyWithBase(
        k_params, obs_dim=OBS, internal_state_size=H, num_actions=A
    )

    value, internal_states, action, action_log_probs, pre_embedding = policy.act(
        observations, states, masks, deterministic=True
    )
    jax.block_until_ready(
        (value, internal_states, action, action_log_probs, policy.probs,
         policy.entropy)
    )

    v_ref, h_ref, a_ref, alp_ref, p_ref, ent_ref = _reference(
        policy.raw_ref, observations, states, masks
    )
    assert jnp.allclose(value, v_ref, atol=1e-3, rtol=1e-3)
    assert jnp.allclose(internal_states, h_ref, atol=1e-3, rtol=1e-3)
    assert jnp.array_equal(action, a_ref)
    assert jnp.allclose(action_log_probs, alp_ref, atol=1e-3, rtol=1e-3)
    assert jnp.allclose(policy.probs, p_ref, atol=1e-3, rtol=1e-3)
    assert jnp.allclose(policy.entropy, ent_ref, atol=1e-3, rtol=1e-3)

    print("KERNEL_OK")
</pallas_src>

<mosaic_0001>
module attributes {stable_mosaic.version = 11 : i64} {
  func.func @kernel(%arg0: memref<8x32xf32, #tpu.memory_space<vmem>>, %arg1: memref<8x128xf32, #tpu.memory_space<vmem>>, %arg2: memref<8x1xf32, #tpu.memory_space<vmem>>, %arg3: memref<544x256xbf16, #tpu.memory_space<vmem>>, %arg4: memref<1x768xf32, #tpu.memory_space<vmem>>, %arg5: memref<8x256xf32, #tpu.memory_space<vmem>>) attributes {dimension_semantics = [], scalar_prefetch = 0 : i64, scratch_operands = 0 : i64, tpu.core_type = #tpu.core_type<tc>} {
    %c0 = arith.constant 0 : index
    %c0_0 = arith.constant 0 : index
    %0 = vector.load %arg0[%c0, %c0_0] : memref<8x32xf32, #tpu.memory_space<vmem>>, vector<8x32xf32>
    %c384 = arith.constant 384 : index
    %c0_1 = arith.constant 0 : index
    %1 = vector.load %arg3[%c384, %c0_1] : memref<544x256xbf16, #tpu.memory_space<vmem>>, vector<32x128xbf16>
    %2 = arith.extf %1 : vector<32x128xbf16> to vector<32x128xf32>
    %cst = arith.constant dense<0.000000e+00> : vector<8x128xf32>
    %3 = tpu.matmul %0, %2, %cst {dimension_numbers = #tpu.dot_dimension_numbers<[1], [0], [0], [1], [0, 0, 1, 1], [], []>} : vector<8x32xf32>, vector<32x128xf32>, vector<8x128xf32> -> vector<8x128xf32>
    %c0_2 = arith.constant 0 : index
    %c0_3 = arith.constant 0 : index
    %4 = vector.load %arg4[%c0_2, %c0_3] : memref<1x768xf32, #tpu.memory_space<vmem>>, vector<1x128xf32>
    %5 = vector.broadcast %4 : vector<1x128xf32> to vector<8x128xf32>
    %6 = arith.addf %3, %5 : vector<8x128xf32>
    %cst_4 = arith.constant 0.000000e+00 : f32
    %7 = vector.broadcast %cst_4 : f32 to vector<8x128xf32>
    %8 = arith.maximumf %6, %7 : vector<8x128xf32>
    %c0_5 = arith.constant 0 : index
    %c0_6 = arith.constant 0 : index
    %9 = vector.load %arg1[%c0_5, %c0_6] : memref<8x128xf32, #tpu.memory_space<vmem>>, vector<8x128xf32>
    %c0_7 = arith.constant 0 : index
    %c0_8 = arith.constant 0 : index
    %10 = vector.load %arg2[%c0_7, %c0_8] : memref<8x1xf32, #tpu.memory_space<vmem>>, vector<8x1xf32>
    %11 = vector.broadcast %10 : vector<8x1xf32> to vector<8x128xf32>
    %12 = arith.mulf %9, %11 : vector<8x128xf32>
    %13 = tpu.concatenate %8, %12 in 1 : vector<8x128xf32>, vector<8x128xf32> -> vector<8x256xf32>
    %c0_9 = arith.constant 0 : index
    %c0_10 = arith.constant 0 : index
    %14 = vector.load %arg3[%c0_9, %c0_10] : memref<544x256xbf16, #tpu.memory_space<vmem>>, vector<256x256xbf16>
    %15 = arith.extf %14 : vector<256x256xbf16> to vector<256x256xf32>
    %cst_11 = arith.constant dense<0.000000e+00> : vector<8x256xf32>
    %16 = tpu.matmul %13, %15, %cst_11 {dimension_numbers = #tpu.dot_dimension_numbers<[1], [0], [0], [1], [0, 0, 1, 1], [], []>} : vector<8x256xf32>, vector<256x256xf32>, vector<8x256xf32> -> vector<8x256xf32>
    %c0_12 = arith.constant 0 : index
    %c128 = arith.constant 128 : index
    %17 = vector.load %arg4[%c0_12, %c128] : memref<1x768xf32, #tpu.memory_space<vmem>>, vector<1x256xf32>
    %18 = vector.broadcast %17 : vector<1x256xf32> to vector<8x256xf32>
    %19 = arith.addf %16, %18 : vector<8x256xf32>
    %20 = arith.negf %19 : vector<8x256xf32>
    %21 = math.exp %20 : vector<8x256xf32>
    %cst_13 = arith.constant 1.000000e+00 : f32
    %22 = vector.broadcast %cst_13 : f32 to vector<8x256xf32>
    %23 = arith.addf %22, %21 : vector<8x256xf32>
    %24 = arith.divf %22, %23 : vector<8x256xf32>
    %25 = vector.extract_strided_slice %24 {offsets = [0, 0], sizes = [8, 128], strides = [1, 1]} : vector<8x256xf32> to vector<8x128xf32>
    %26 = vector.extract_strided_slice %24 {offsets = [0, 128], sizes = [8, 128], strides = [1, 1]} : vector<8x256xf32> to vector<8x128xf32>
    %c256 = arith.constant 256 : index
    %c0_14 = arith.constant 0 : index
    %27 = vector.load %arg3[%c256, %c0_14] : memref<544x256xbf16, #tpu.memory_space<vmem>>, vector<128x128xbf16>
    %28 = arith.extf %27 : vector<128x128xbf16> to vector<128x128xf32>
    %cst_15 = arith.constant dense<0.000000e+00> : vector<8x128xf32>
    %29 = tpu.matmul %8, %28, %cst_15 {dimension_numbers = #tpu.dot_dimension_numbers<[1], [0], [0], [1], [0, 0, 1, 1], [], []>} : vector<8x128xf32>, vector<128x128xf32>, vector<8x128xf32> -> vector<8x128xf32>
    %c0_16 = arith.constant 0 : index
    %c384_17 = arith.constant 384 : index
    %30 = vector.load %arg4[%c0_16, %c384_17] : memref<1x768xf32, #tpu.memory_space<vmem>>, vector<1x128xf32>
    %31 = vector.broadcast %30 : vector<1x128xf32> to vector<8x128xf32>
    %32 = arith.addf %29, %31 : vector<8x128xf32>
    %c256_18 = arith.constant 256 : index
    %c128_19 = arith.constant 128 : index
    %33 = vector.load %arg3[%c256_18, %c128_19] : memref<544x256xbf16, #tpu.memory_space<vmem>>, vector<128x128xbf16>
    %34 = arith.extf %33 : vector<128x128xbf16> to vector<128x128xf32>
    %cst_20 = arith.constant dense<0.000000e+00> : vector<8x128xf32>
    %35 = tpu.matmul %12, %34, %cst_20 {dimension_numbers = #tpu.dot_dimension_numbers<[1], [0], [0], [1], [0, 0, 1, 1], [], []>} : vector<8x128xf32>, vector<128x128xf32>, vector<8x128xf32> -> vector<8x128xf32>
    %c0_21 = arith.constant 0 : index
    %c512 = arith.constant 512 : index
    %36 = vector.load %arg4[%c0_21, %c512] : memref<1x768xf32, #tpu.memory_space<vmem>>, vector<1x128xf32>
    %37 = vector.broadcast %36 : vector<1x128xf32> to vector<8x128xf32>
    %38 = arith.addf %35, %37 : vector<8x128xf32>
    %39 = arith.mulf %25, %38 : vector<8x128xf32>
    %40 = arith.addf %32, %39 : vector<8x128xf32>
    %41 = math.tanh %40 : vector<8x128xf32>
    %cst_22 = arith.constant 1.000000e+00 : f32
    %42 = vector.broadcast %cst_22 : f32 to vector<8x128xf32>
    %43 = arith.subf %42, %26 : vector<8x128xf32>
    %44 = arith.mulf %43, %41 : vector<8x128xf32>
    %45 = arith.mulf %26, %12 : vector<8x128xf32>
    %46 = arith.addf %44, %45 : vector<8x128xf32>
    %c416 = arith.constant 416 : index
    %c0_23 = arith.constant 0 : index
    %47 = vector.load %arg3[%c416, %c0_23] : memref<544x256xbf16, #tpu.memory_space<vmem>>, vector<128x128xbf16>
    %48 = arith.extf %47 : vector<128x128xbf16> to vector<128x128xf32>
    %cst_24 = arith.constant dense<0.000000e+00> : vector<8x128xf32>
    %49 = tpu.matmul %46, %48, %cst_24 {dimension_numbers = #tpu.dot_dimension_numbers<[1], [0], [0], [1], [0, 0, 1, 1], [], []>} : vector<8x128xf32>, vector<128x128xf32>, vector<8x128xf32> -> vector<8x128xf32>
    %c0_25 = arith.constant 0 : index
    %c640 = arith.constant 640 : index
    %50 = vector.load %arg4[%c0_25, %c640] : memref<1x768xf32, #tpu.memory_space<vmem>>, vector<1x128xf32>
    %51 = vector.broadcast %50 : vector<1x128xf32> to vector<8x128xf32>
    %52 = arith.addf %49, %51 : vector<8x128xf32>
    %53 = tpu.iota {dimensions = array<i32: 1>} : vector<8x128xi32>
    %c1_i32 = arith.constant 1 : i32
    %54 = vector.broadcast %c1_i32 : i32 to vector<8x128xi32>
    %55 = arith.cmpi sge, %53, %54 : vector<8x128xi32>
    %c4_i32 = arith.constant 4 : i32
    %56 = vector.broadcast %c4_i32 : i32 to vector<8x128xi32>
    %57 = arith.cmpi sle, %53, %56 : vector<8x128xi32>
    %58 = arith.andi %55, %57 : vector<8x128xi1>
    %cst_26 = arith.constant 0xFF800000 : f32
    %59 = vector.broadcast %cst_26 : f32 to vector<8x128xf32>
    %60 = arith.select %58, %52, %59 : vector<8x128xi1>, vector<8x128xf32>
    %cst_27 = arith.constant dense<0xFF800000> : vector<8xf32>
    %61 = vector.multi_reduction <maximumf>, %60, %cst_27 [1] : vector<8x128xf32> to vector<8xf32>
    %62 = vector.shape_cast %61 : vector<8xf32> to vector<8x1xf32>
    %63 = vector.broadcast %62 : vector<8x1xf32> to vector<8x128xf32>
    %64 = arith.subf %52, %63 : vector<8x128xf32>
    %65 = math.exp %64 : vector<8x128xf32>
    %cst_28 = arith.constant 0.000000e+00 : f32
    %66 = vector.broadcast %cst_28 : f32 to vector<8x128xf32>
    %67 = arith.select %58, %65, %66 : vector<8x128xi1>, vector<8x128xf32>
    %cst_29 = arith.constant dense<0.000000e+00> : vector<8xf32>
    %68 = vector.multi_reduction <add>, %67, %cst_29 [1] : vector<8x128xf32> to vector<8xf32>
    %69 = vector.shape_cast %68 : vector<8xf32> to vector<8x1xf32>
    %70 = vector.broadcast %69 : vector<8x1xf32> to vector<8x128xf32>
    %71 = arith.divf %67, %70 : vector<8x128xf32>
    %72 = math.log %69 : vector<8x1xf32>
    %73 = vector.broadcast %72 : vector<8x1xf32> to vector<8x128xf32>
    %74 = arith.subf %64, %73 : vector<8x128xf32>
    %75 = arith.mulf %71, %74 : vector<8x128xf32>
    %cst_30 = arith.constant 0.000000e+00 : f32
    %76 = vector.broadcast %cst_30 : f32 to vector<8x128xf32>
    %77 = arith.select %58, %75, %76 : vector<8x128xi1>, vector<8x128xf32>
    %cst_31 = arith.constant dense<0.000000e+00> : vector<8xf32>
    %78 = vector.multi_reduction <add>, %77, %cst_31 [1] : vector<8x128xf32> to vector<8xf32>
    %79 = vector.shape_cast %78 : vector<8xf32> to vector<8x1xf32>
    %cst_32 = arith.constant 0.000000e+00 : f32
    %80 = vector.broadcast %cst_32 : f32 to vector<8x1xf32>
    %81 = arith.subf %80, %79 : vector<8x1xf32>
    %82 = vector.broadcast %62 : vector<8x1xf32> to vector<8x128xf32>
    %83 = arith.cmpf oeq, %52, %82 : vector<8x128xf32>
    %84 = arith.andi %58, %83 : vector<8x128xi1>
    %c128_i32 = arith.constant 128 : i32
    %85 = vector.broadcast %c128_i32 : i32 to vector<8x128xi32>
    %86 = arith.select %84, %53, %85 : vector<8x128xi1>, vector<8x128xi32>
    %cst_33 = arith.constant dense<2147483647> : vector<8xi32>
    %87 = vector.multi_reduction <minsi>, %86, %cst_33 [1] : vector<8x128xi32> to vector<8xi32>
    %88 = vector.shape_cast %87 : vector<8xi32> to vector<8x1xi32>
    %c1_i32_34 = arith.constant 1 : i32
    %89 = vector.broadcast %c1_i32_34 : i32 to vector<8x1xi32>
    %90 = arith.subi %88, %89 : vector<8x1xi32>
    %91 = vector.broadcast %88 : vector<8x1xi32> to vector<8x128xi32>
    %92 = arith.cmpi eq, %53, %91 : vector<8x128xi32>
    %cst_35 = arith.constant 0.000000e+00 : f32
    %93 = vector.broadcast %cst_35 : f32 to vector<8x128xf32>
    %94 = arith.select %92, %74, %93 : vector<8x128xi1>, vector<8x128xf32>
    %cst_36 = arith.constant dense<0.000000e+00> : vector<8xf32>
    %95 = vector.multi_reduction <add>, %94, %cst_36 [1] : vector<8x128xf32> to vector<8xf32>
    %96 = vector.shape_cast %95 : vector<8xf32> to vector<8x1xf32>
    %c0_i32 = arith.constant 0 : i32
    %97 = vector.broadcast %c0_i32 : i32 to vector<8x128xi32>
    %98 = arith.cmpi eq, %53, %97 : vector<8x128xi32>
    %c5_i32 = arith.constant 5 : i32
    %99 = vector.broadcast %c5_i32 : i32 to vector<8x128xi32>
    %100 = arith.cmpi eq, %53, %99 : vector<8x128xi32>
    %c6_i32 = arith.constant 6 : i32
    %101 = vector.broadcast %c6_i32 : i32 to vector<8x128xi32>
    %102 = arith.cmpi eq, %53, %101 : vector<8x128xi32>
    %c7_i32 = arith.constant 7 : i32
    %103 = vector.broadcast %c7_i32 : i32 to vector<8x128xi32>
    %104 = arith.cmpi eq, %53, %103 : vector<8x128xi32>
    %105 = arith.sitofp %90 : vector<8x1xi32> to vector<8x1xf32>
    %cst_37 = arith.constant 0.000000e+00 : f32
    %106 = vector.shape_cast %105 : vector<8x1xf32> to vector<8x1xf32>
    %107 = vector.broadcast %106 : vector<8x1xf32> to vector<8x128xf32>
    %108 = vector.broadcast %cst_37 : f32 to vector<8x128xf32>
    %109 = arith.select %104, %107, %108 : vector<8x128xi1>, vector<8x128xf32>
    %110 = vector.shape_cast %81 : vector<8x1xf32> to vector<8x1xf32>
    %111 = vector.broadcast %110 : vector<8x1xf32> to vector<8x128xf32>
    %112 = arith.select %102, %111, %109 : vector<8x128xi1>, vector<8x128xf32>
    %113 = vector.shape_cast %96 : vector<8x1xf32> to vector<8x1xf32>
    %114 = vector.broadcast %113 : vector<8x1xf32> to vector<8x128xf32>
    %115 = arith.select %100, %114, %112 : vector<8x128xi1>, vector<8x128xf32>
    %116 = arith.select %58, %71, %115 : vector<8x128xi1>, vector<8x128xf32>
    %117 = arith.select %98, %52, %116 : vector<8x128xi1>, vector<8x128xf32>
    %118 = tpu.concatenate %46, %117 in 1 : vector<8x128xf32>, vector<8x128xf32> -> vector<8x256xf32>
    %c0_38 = arith.constant 0 : index
    %c0_39 = arith.constant 0 : index
    %119 = vector.load %arg5[%c0_38, %c0_39] : memref<8x256xf32, #tpu.memory_space<vmem>>, vector<8x256xf32>
    tpu.vector_store %arg5[%c0_38, %c0_39], %118 {strides = array<i32>} : memref<8x256xf32, #tpu.memory_space<vmem>>, vector<8x256xf32>,
    return
  }
}

</mosaic_0001>

<bundles_post_ra>
// kernel: policy_act.1
= control target key start
LH: loop header
LB: loop body
LE: loop exit
PB: predicated region body
PF: predicated region fallthrough
CT: control target
= control target key end

     0   :  { %10 = vsyncpa [#allocation3], 0  ;;  %s865_s0 = inlined_call_operand.vmem [shape: f32[8,32], index: 0, kind: input, shape index: {}]   ;;  %s866_s1 = inlined_call_operand.hbm [shape: f32[8,128], index: 1, kind: input, shape index: {}]   ;;  %s867_s2 = inlined_call_operand.vmem [shape: f32[8,1], index: 2, kind: input, shape index: {}]   ;;  %s868_s3 = inlined_call_operand.hbm [shape: bf16[544,256], index: 3, kind: input, shape index: {}]   ;;  %s869_s4 = inlined_call_operand.hbm [shape: f32[1,768], index: 4, kind: input, shape index: {}]   ;;  %s870_s5 = inlined_call_operand.vmem [shape: f32[8,256], index: 5, kind: output, shape index: {}]  }
   0x1   :  { %11 = vsyncpa [#allocation5], 0  ;;  %s31_s20 = sshll.u32 %s868_s3, 4  ;;  %s688_s21 = smov [#allocation4]   ;;  %s32_s20 = int_to_ptr.hbm [resolvable:$true] %s31_s20 }
   0x2   :  { %s33_s22 = sshll.u32 %s688_s21, 4  ;;  %s19_s25 = sshll.u32 %s866_s1, 4  ;;  %s34_s22 = int_to_ptr.vmem [resolvable:$true] %s33_s22  ;;  %s20_s25 = int_to_ptr.hbm [resolvable:$true] %s19_s25 }
   0x3   :  { %s689_s26 = smov 128   ;;  %s690_s27 = smov 8  }
   0x4   :  { %39 = dma.hbm_to_vmem [thread:$0]  %s32_s20, 8704, %s34_s22, [#allocation5], %s689_s26, %s689_s26, %s690_s27  }
   0x5   :  { %s691_s28 = smov [#allocation2]   ;;  %s45_s7 = sshll.u32 %s869_s4, 4  ;;  %s46_s7 = int_to_ptr.hbm [resolvable:$true] %s45_s7 }
   0x6   :  { %s21_s29 = sshll.u32 %s691_s28, 4  ;;  %s692_s3 = smov [#allocation6]   ;;  %s22_s29 = int_to_ptr.vmem [resolvable:$true] %s21_s29 }
   0x7   :  { %24 = dma.hbm_to_vmem [thread:$0]  %s20_s25, 128, %s22_s29, [#allocation3]  }
   0x8   :  { %s47_s8 = sshll.u32 %s692_s3, 4  ;;  %s48_s8 = int_to_ptr.vmem [resolvable:$true] %s47_s8 }
   0x9   :  { %50 = dma.hbm_to_vmem [thread:$0]  %s46_s7, 96, %s48_s8, [#allocation5]  }
   0xa   :  { %684 = dma.done.wait [#allocation3], 128  }
   0xb   :  { %685 = vsyncadd [#allocation3], 4294967168 }
   0xc   :  { %686 = dma.done.wait [#allocation5], 8800  }
   0xd   :  { %687 = vsyncadd [#allocation5], 4294958496  ;;  %v693_v0 = vmov 0   ;;  %v67_v1 = vld [vmem:[#allocation4 + $0x198] sm:$0xf]  ;;  %v733_v6 = vld [vmem:[#allocation4 + $0x17c] sm:$0xff]  }
   0xe   :  { %591 = vset.pattern.permute.xlu0 %v693_v0  ;;  %v66_v2 = vld [vmem:[#allocation4 + $0x190] sm:$0xf]  ;;  %v65_v3 = vld [vmem:[#allocation4 + $0x188] sm:$0xf]  ;;  %v71_v4 = vunpack.c.l.bf16 %v67_v1  ;;  %v102_v7 = vld [vmem:[%s867_s2] sm:$0xff]  ;;  %v68_v17 = vunpack.c.h.bf16 %v733_v6  ;;  %vm76_vm0 = vcmask 261120  }
   0xf   :  { %v70_v5 = vunpack.c.l.bf16 %v66_v2  ;;  %105 = vperm.xlu0 %591, %v102_v7   ;;  %v140_v8 = vld [vmem:[#allocation4 + $0xf8] sm:$0xff]  ;;  %v139_v9 = vld [vmem:[#allocation4 + $0xf0] sm:$0xff]  ;;  %v138_v10 = vld [vmem:[#allocation4 + $0xe8] sm:$0xff]  ;;  %v69_v11 = vunpack.c.l.bf16 %v65_v3 }
  0x10   :  { %92 = vmatpush.msra.mxu0 %v71_v4  ;;  %v203_v12 = vunpack.c.l.bf16 %v140_v8  ;;  %v201_v13 = vunpack.c.l.bf16 %v139_v9  ;;  %v738_v14 = vld [vmem:[#allocation4 + $0xe0] sm:$0xff]  ;;  %v124_v15 = vld [vmem:[#allocation4 + $0x78] sm:$0xff]  ;;  %v123_v16 = vld [vmem:[#allocation4 + $0x70] sm:$0xff]  ;;  %v199_v18 = vunpack.c.l.bf16 %v138_v10  ;;  %v204_v27 = vunpack.c.h.bf16 %v140_v8 }
  0x11   :  { %v171_v19 = vunpack.c.l.bf16 %v124_v15  ;;  %v122_v20 = vld [vmem:[#allocation4 + $0x68] sm:$0xff]  ;;  %v741_v21 = vld [vmem:[#allocation4 + $0xd8] sm:$0xff]  ;;  %v169_v22 = vunpack.c.l.bf16 %v123_v16  ;;  %v172_v23 = vunpack.c.h.bf16 %v124_v15  ;;  %v197_v25 = vunpack.c.l.bf16 %v738_v14  ;;  %v121_v26 = vld [vmem:[#allocation4 + $0x60] sm:$0xff] }
  0x12   :  { %93 = vmatpush.msra.mxu0 %v70_v5  ;;  %231 = vmatpush.msra.mxu2 %v203_v12  ;;  %v63_v24 = vld [vmem:[%s865_s0] sm:$0xff]  ;;  %v747_v28 = vld [vmem:[#allocation4 + $0xd0] sm:$0xff]  ;;  %v167_v29 = vunpack.c.l.bf16 %v122_v20  ;;  %v170_v30 = vunpack.c.h.bf16 %v123_v16  ;;  %v195_v31 = vunpack.c.l.bf16 %v741_v21  ;;  %v202_v33 = vunpack.c.h.bf16 %v139_v9  ;;  %v750_v34 = vld [vmem:[#allocation4 + $0xc8] sm:$0xff] }
  0x13   :  { %211 = vmatpush.msra.mxu1 %v171_v19  ;;  %251 = vmatpush.msra.mxu3 %v172_v23  ;;  %v120_v32 = vld [vmem:[#allocation4 + $0x58] sm:$0xff]  ;;  %v165_v35 = vunpack.c.l.bf16 %v121_v26  ;;  %v168_v36 = vunpack.c.h.bf16 %v122_v20  ;;  %v193_v37 = vunpack.c.l.bf16 %v747_v28  ;;  %v119_v38 = vld [vmem:[#allocation4 + $0x50] sm:$0xff]  ;;  %v200_v39 = vunpack.c.h.bf16 %v138_v10  ;;  %v753_v40 = vld [vmem:[#allocation4 + $0xc0] sm:$0xff] }
  0x14   :  { %94 = vmatpush.msra.mxu0 %v69_v11  ;;  %232 = vmatpush.msra.mxu2 %v201_v13  ;;  %v163_v41 = vunpack.c.l.bf16 %v120_v32  ;;  %v166_v42 = vunpack.c.h.bf16 %v121_v26  ;;  %v191_v43 = vunpack.c.l.bf16 %v750_v34  ;;  %v118_v44 = vld [vmem:[#allocation4 + $0x48] sm:$0xff]  ;;  %v198_v45 = vunpack.c.h.bf16 %v738_v14  ;;  %v757_v46 = vld [vmem:[#allocation4 + $0xb8] sm:$0xff]  ;;  %v117_v48 = vld [vmem:[#allocation4 + $0x40] sm:$0xff] }
  0x15   :  { %212 = vmatpush.msra.mxu1 %v169_v22  ;;  %252 = vmatpush.msra.mxu3 %v170_v30  ;;  %v161_v47 = vunpack.c.l.bf16 %v119_v38  ;;  %v164_v49 = vunpack.c.h.bf16 %v120_v32  ;;  %v189_v50 = vunpack.c.l.bf16 %v753_v40  ;;  %v196_v51 = vunpack.c.h.bf16 %v741_v21  ;;  %v761_v52 = vld [vmem:[#allocation4 + $0xb0] sm:$0xff]  ;;  %v116_v56 = vld [vmem:[#allocation4 + $0x38] sm:$0xff]  ;;  %v765_v58 = vld [vmem:[#allocation4 + $0xa8] sm:$0xff] }
  0x16   :  { %95 = vmatpush.msra.mxu0 %v68_v17  ;;  %233 = vmatpush.msra.mxu2 %v199_v18  ;;  %v159_v53 = vunpack.c.l.bf16 %v118_v44  ;;  %v162_v54 = vunpack.c.h.bf16 %v119_v38  ;;  %v187_v55 = vunpack.c.l.bf16 %v757_v46  ;;  %v194_v57 = vunpack.c.h.bf16 %v747_v28  ;;  %v768_v62 = vld [vmem:[#allocation4 + $0x30] sm:$0xff]  ;;  %v771_v0 = vld [vmem:[#allocation4 + $0xa0] sm:$0xff]  ;;  %v774_v4 = vld [vmem:[#allocation4 + $0x28] sm:$0xff] }
  0x17   :  { %581 = vmatmul.msk.f32.vlgmr.msra.gmra.mxu0 %vm76_vm0, %v63_v24  ;;  %213 = vmatpush.msra.mxu1 %v167_v29  ;;  %v157_v59 = vunpack.c.l.bf16 %v117_v48  ;;  %v160_v60 = vunpack.c.h.bf16 %v118_v44  ;;  %v185_v61 = vunpack.c.l.bf16 %v761_v52  ;;  %v192_v63 = vunpack.c.h.bf16 %v750_v34  ;;  %v777_v7 = vld [vmem:[#allocation4 + $0x98] sm:$0xff]  ;;  %v781_v11 = vld [vmem:[#allocation4 + $0x20] sm:$0xff]  ;;  %v784_v13 = vld [vmem:[#allocation4 + $0x90] sm:$0xff] }
  0x18   :  { %234 = vmatpush.msra.mxu2 %v197_v25  ;;  %271 = vmatpush.msrb.mxu0 %v204_v27  ;;  %v155_v1 = vunpack.c.l.bf16 %v116_v56  ;;  %v158_v2 = vunpack.c.h.bf16 %v117_v48  ;;  %v183_v3 = vunpack.c.l.bf16 %v765_v58  ;;  %v190_v5 = vunpack.c.h.bf16 %v753_v40  ;;  %v788_v16 = vld [vmem:[#allocation4 + $0x18] sm:$0xff]  ;;  %v791_v18 = vld [vmem:[#allocation4 + $0x88] sm:$0xff]  ;;  %v795_v21 = vld [vmem:[#allocation4 + $0x10] sm:$0xff] }
  0x19   :  { %214 = vmatpush.msra.mxu1 %v165_v35  ;;  %253 = vmatpush.msra.mxu3 %v168_v36  ;;  %v153_v8 = vunpack.c.l.bf16 %v768_v62  ;;  %v156_v9 = vunpack.c.h.bf16 %v116_v56  ;;  %v181_v10 = vunpack.c.l.bf16 %v771_v0  ;;  %v188_v12 = vunpack.c.h.bf16 %v757_v46  ;;  %v797_v22 = vld [vmem:[#allocation4 + $0x80] sm:$0xff]  ;;  %v801_v25 = vld [vmem:[#allocation4 + $0x8] sm:$0xff]  ;;  %v399_v28 = vld [vmem:[#allocation4 + $0x174] sm:$0xff]  }
  0x1a   :  { %235 = vmatpush.msra.mxu2 %v195_v31  ;;  %272 = vmatpush.msrb.mxu0 %v202_v33  ;;  %v151_v14 = vunpack.c.l.bf16 %v774_v4  ;;  %v179_v15 = vunpack.c.l.bf16 %v777_v7  ;;  %v186_v17 = vunpack.c.h.bf16 %v761_v52  ;;  %v149_v19 = vunpack.c.l.bf16 %v781_v11  ;;  %v805_v29 = vld [vmem:[#allocation4] sm:$0xff]  ;;  %v398_v32 = vld [vmem:[#allocation4 + $0x16c] sm:$0xff]  }
  0x1b   :  { %215 = vmatpush.msra.mxu1 %v163_v41  ;;  %254 = vmatpush.msra.mxu3 %v166_v42  ;;  %v177_v20 = vunpack.c.l.bf16 %v784_v13  ;;  %v147_v23 = vunpack.c.l.bf16 %v788_v16  ;;  %v175_v24 = vunpack.c.l.bf16 %v791_v18  ;;  %v145_v26 = vunpack.c.l.bf16 %v795_v21  ;;  %v397_v35 = vld [vmem:[#allocation4 + $0x164] sm:$0xff]   ;;  %v396_v38 = vld [vmem:[#allocation4 + $0x15c] sm:$0xff]  }
  0x1c   :  { %236 = vmatpush.msra.mxu2 %v193_v37  ;;  %273 = vmatpush.msrb.mxu0 %v200_v39  ;;  %v173_v27 = vunpack.c.l.bf16 %v797_v22  ;;  %v416_v30 = vunpack.c.l.bf16 %v733_v6  ;;  %v143_v31 = vunpack.c.l.bf16 %v801_v25  ;;  %v415_v33 = vunpack.c.l.bf16 %v399_v28  ;;  %v395_v6 = vld [vmem:[#allocation4 + $0x154] sm:$0xff]   ;;  %v393_v46 = vld [vmem:[#allocation4 + $0x144] sm:$0xff]  }
  0x1d   :  { %216 = vmatpush.msra.mxu1 %v161_v47  ;;  %255 = vmatpush.msra.mxu3 %v164_v49  ;;  %v141_v34 = vunpack.c.l.bf16 %v805_v29  ;;  %v360_v36 = vunpack.c.h.bf16 %v399_v28  ;;  %v414_v37 = vunpack.c.l.bf16 %v398_v32  ;;  %v359_v39 = vunpack.c.h.bf16 %v398_v32  ;;  %v392_v49 = vld [vmem:[#allocation4 + $0x13c] sm:$0xff]  }
  0x1e   :  { %237 = vmatpush.msra.mxu2 %v191_v43  ;;  %274 = vmatpush.msrb.mxu0 %v198_v45  ;;  %v413_v40 = vunpack.c.l.bf16 %v397_v35  ;;  %v358_v41 = vunpack.c.h.bf16 %v397_v35  ;;  %v412_v42 = vunpack.c.l.bf16 %v396_v38  ;;  %v394_v43 = vld [vmem:[#allocation4 + $0x14c] sm:$0xff]   ;;  %v357_v44 = vunpack.c.h.bf16 %v396_v38  ;;  %v463_v35 = vld [vmem:[#allocation4 + $0x218] sm:$0xf] }
  0x1f   :  { %217 = vmatpush.msra.mxu1 %v159_v53  ;;  %256 = vmatpush.msra.mxu3 %v162_v54  ;;  %v411_v45 = vunpack.c.l.bf16 %v395_v6  ;;  %v356_v47 = vunpack.c.h.bf16 %v395_v6  ;;  %v410_v48 = vunpack.c.l.bf16 %v394_v43  ;;  %v408_v52 = vunpack.c.l.bf16 %v392_v49  ;;  %v390_v53 = vld [vmem:[#allocation4 + $0x12c] sm:$0xff]   ;;  %v460_v6 = vld [vmem:[#allocation4 + $0x200] sm:$0xf] }
  0x20   :  { %238 = vmatpush.msra.mxu2 %v189_v50  ;;  %275 = vmatpush.msrb.mxu0 %v196_v51  ;;  %v409_v50 = vunpack.c.l.bf16 %v393_v46  ;;  %v391_v51 = vld [vmem:[#allocation4 + $0x134] sm:$0xff]   ;;  %v184_v56 = vunpack.c.h.bf16 %v765_v58 }
  0x21   :  { %218 = vmatpush.msra.mxu1 %v157_v59  ;;  %257 = vmatpush.msra.mxu3 %v160_v60  ;;  %v407_v54 = vunpack.c.l.bf16 %v391_v51  ;;  %v182_v59 = vunpack.c.h.bf16 %v771_v0  ;;  %v355_v60 = vunpack.c.h.bf16 %v394_v43 }
  0x22   :  { %239 = vmatpush.msra.mxu2 %v187_v55  ;;  %276 = vmatpush.msrb.mxu0 %v194_v57  ;;  %v406_v55 = vunpack.c.l.bf16 %v390_v53  ;;  %v154_v57 = vunpack.c.h.bf16 %v768_v62  ;;  %v353_v62 = vunpack.c.h.bf16 %v392_v49  ;;  %v456_v49 = vld [vmem:[#allocation4 + $0x1e0] sm:$0xf] }
  0x23   :  { %219 = vmatpush.msra.mxu1 %v155_v1  ;;  %258 = vmatpush.msra.mxu3 %v158_v2  ;;  %v152_v1 = vunpack.c.h.bf16 %v774_v4  ;;  %v180_v2 = vunpack.c.h.bf16 %v777_v7  ;;  %v352_v4 = vunpack.c.h.bf16 %v391_v51  ;;  %v472_v51 = vunpack.c.l.bf16 %v456_v49 }
  0x24   :  { %240 = vmatpush.msra.mxu2 %v185_v61  ;;  %277 = vmatpush.msrb.mxu0 %v192_v63  ;;  %v389_v61 = vld [vmem:[#allocation4 + $0x124] sm:$0xff]  }
  0x25   :  { %220 = vmatpush.msra.mxu1 %v153_v8  ;;  %259 = vmatpush.msra.mxu3 %v156_v9  ;;  %v405_v63 = vunpack.c.l.bf16 %v389_v61  ;;  %v150_v8 = vunpack.c.h.bf16 %v781_v11  ;;  %v387_v9 = vld [vmem:[#allocation4 + $0x114] sm:$0xff]   ;;  %v176_v11 = vunpack.c.h.bf16 %v791_v18  ;;  %v142_v18 = vunpack.c.h.bf16 %v805_v29  ;;  %v592_v29 = vld [vmem:[#allocation6] ss:$0 sm:$0xff] }
  0x26   :  { %241 = vmatpush.msra.mxu2 %v183_v3  ;;  %278 = vmatpush.msrb.mxu0 %v190_v5  ;;  %v354_v3 = vunpack.c.h.bf16 %v393_v46  ;;  %v388_v5 = vld [vmem:[#allocation4 + $0x11c] sm:$0xff]   ;;  %v403_v0 = vunpack.c.l.bf16 %v387_v9 }
  0x27   :  { %221 = vmatpush.msra.mxu1 %v151_v14  ;;  %260 = vmatpush.msra.mxu3 %v154_v57  ;;  %v404_v58 = vunpack.c.l.bf16 %v388_v5  ;;  %v148_v14 = vunpack.c.h.bf16 %v788_v16  ;;  %v174_v16 = vunpack.c.h.bf16 %v797_v22  ;;  %v205_v46 = vld [vmem:[#allocation6 + $0x1] sm:$0x3] }
  0x28   :  { %242 = vmatpush.msra.mxu2 %v181_v10  ;;  %279 = vmatpush.msrb.mxu0 %v188_v12  ;;  %v386_v10 = vld [vmem:[#allocation4 + $0x10c] sm:$0xff]   ;;  %v178_v12 = vunpack.c.h.bf16 %v784_v13  ;;  %v146_v13 = vunpack.c.h.bf16 %v795_v21 }
  0x29   :  { %222 = vmatpush.msra.mxu1 %v149_v19  ;;  %261 = vmatpush.msra.mxu3 %v152_v1  ;;  %v402_v7 = vunpack.c.l.bf16 %v386_v10  ;;  %v347_v21 = vunpack.c.h.bf16 %v386_v10 }
  0x2a   :  { %243 = vmatpush.msra.mxu2 %v179_v15  ;;  %280 = vmatpush.msrb.mxu0 %v186_v17  ;;  %v385_v15 = vld [vmem:[#allocation4 + $0x104] sm:$0xff]   ;;  %v351_v17 = vunpack.c.h.bf16 %v390_v53 }
  0x2b   :  { %223 = vmatpush.msra.mxu1 %v147_v23  ;;  %262 = vmatpush.msra.mxu3 %v150_v8  ;;  %v401_v19 = vunpack.c.l.bf16 %v385_v15  ;;  %v350_v23 = vunpack.c.h.bf16 %v389_v61  ;;  %v346_v22 = vunpack.c.h.bf16 %v385_v15  ;;  %v451_v8 = vld [vmem:[#allocation4 + $0x1b8] sm:$0xf] }
  0x2c   :  { %244 = vmatpush.msra.mxu2 %v177_v20  ;;  %281 = vmatpush.msrb.mxu0 %v184_v56  ;;  %v144_v20 = vunpack.c.h.bf16 %v801_v25 }
  0x2d   :  { %224 = vmatpush.msra.mxu1 %v145_v26  ;;  %263 = vmatpush.msra.mxu3 %v148_v14  ;;  %v348_v26 = vunpack.c.h.bf16 %v387_v9  ;;  %v450_v9 = vld [vmem:[#allocation4 + $0x1b0] sm:$0xf] }
  0x2e   :  { %245 = vmatpush.msra.mxu2 %v175_v24  ;;  %282 = vmatpush.msrb.mxu0 %v182_v59  ;;  %v349_v24 = vunpack.c.h.bf16 %v388_v5 }
  0x2f   :  { %225 = vmatpush.msra.mxu1 %v143_v31  ;;  %264 = vmatpush.msra.mxu3 %v146_v13 }
  0x30   :  { %246 = vmatpush.msra.mxu2 %v173_v27  ;;  %283 = vmatpush.msrb.mxu0 %v180_v2  ;;  %v329_v27 = vld [vmem:[#allocation4 + $0x100] sm:$0xf] }
  0x31   :  { %226 = vmatpush.msra.mxu1 %v141_v34  ;;  %265 = vmatpush.msra.mxu3 %v144_v20  ;;  %v345_v28 = vunpack.c.l.bf16 %v329_v27  ;;  %v452_v2 = vld [vmem:[#allocation4 + $0x1c0] sm:$0xf] }
  0x32   :  { %421 = vmatpush.msrb.mxu2 %v416_v30  ;;  %284 = vmatpush.msrb.mxu0 %v178_v12  ;;  %v101_v30 = vld [vmem:[#allocation2] sm:$0xff]  ;;  %v468_v5 = vunpack.c.l.bf16 %v452_v2  ;;  %v466_v12 = vunpack.c.l.bf16 %v450_v9 }
  0x33   :  { %365 = vmatpush.msrb.mxu1 %v360_v36  ;;  %266 = vmatpush.msra.mxu3 %v142_v18  ;;  %v479_v36 = vunpack.c.l.bf16 %v463_v35 }
  0x34   :  { %422 = vmatpush.msrb.mxu2 %v415_v33  ;;  %285 = vmatpush.msrb.mxu0 %v176_v11 }
  0x35   :  { %366 = vmatpush.msrb.mxu1 %v359_v39  ;;  %484 = vmatpush.msrb.mxu3 %v479_v36  ;;  %v461_v39 = vld [vmem:[#allocation4 + $0x208] sm:$0xf] }
  0x36   :  { %423 = vmatpush.msrb.mxu2 %v414_v37  ;;  %286 = vmatpush.msrb.mxu0 %v174_v16  ;;  %v462_v37 = vld [vmem:[#allocation4 + $0x210] sm:$0xf] }
  0x37   :  { %367 = vmatpush.msrb.mxu1 %v358_v41  ;;  %v478_v38 = vunpack.c.l.bf16 %v462_v37  ;;  %v476_v41 = vunpack.c.l.bf16 %v460_v6 }
  0x38   :  { %424 = vmatpush.msrb.mxu2 %v413_v40  ;;  %v477_v40 = vunpack.c.l.bf16 %v461_v39 }
  0x39   :  { %368 = vmatpush.msrb.mxu1 %v357_v44  ;;  %485 = vmatpush.msrb.mxu3 %v478_v38  ;;  %v458_v44 = vld [vmem:[#allocation4 + $0x1f0] sm:$0xf] }
  0x3a   :  { %425 = vmatpush.msrb.mxu2 %v412_v42  ;;  %v459_v42 = vld [vmem:[#allocation4 + $0x1f8] sm:$0xf] }
  0x3b   :  { %369 = vmatpush.msrb.mxu1 %v356_v47  ;;  %486 = vmatpush.msrb.mxu3 %v477_v40  ;;  %v475_v43 = vunpack.c.l.bf16 %v459_v42  ;;  %v457_v47 = vld [vmem:[#allocation4 + $0x1e8] sm:$0xf] }
  0x3c   :  { %426 = vmatpush.msrb.mxu2 %v411_v45  ;;  %v474_v45 = vunpack.c.l.bf16 %v458_v44 }
  0x3d   :  { %370 = vmatpush.msrb.mxu1 %v355_v60  ;;  %487 = vmatpush.msrb.mxu3 %v476_v41  ;;  %v453_v60 = vld [vmem:[#allocation4 + $0x1c8] sm:$0xf] }
  0x3e   :  { %427 = vmatpush.msrb.mxu2 %v410_v48  ;;  %v473_v48 = vunpack.c.l.bf16 %v457_v47  ;;  %v469_v1 = vunpack.c.l.bf16 %v453_v60 }
  0x3f   :  { %371 = vmatpush.msrb.mxu1 %v354_v3  ;;  %488 = vmatpush.msrb.mxu3 %v475_v43 }
  0x40   :  { %428 = vmatpush.msrb.mxu2 %v409_v50  ;;  %v207_v50 = vperm.slane %v205_v46, 0 }
  0x41   :  { %372 = vmatpush.msrb.mxu1 %v353_v62  ;;  %489 = vmatpush.msrb.mxu3 %v474_v45  ;;  %v449_v62 = vld [vmem:[#allocation4 + $0x1a8] sm:$0xf] }
  0x42   :  { %429 = vmatpush.msrb.mxu2 %v408_v52  ;;  %v455_v52 = vld [vmem:[#allocation4 + $0x1d8] sm:$0xf]  ;;  %v465_v11 = vunpack.c.l.bf16 %v449_v62 }
  0x43   :  { %373 = vmatpush.msrb.mxu1 %v352_v4  ;;  %490 = vmatpush.msrb.mxu3 %v473_v48  ;;  %v471_v53 = vunpack.c.l.bf16 %v455_v52  ;;  %v448_v4 = vld [vmem:[#allocation4 + $0x1a0] sm:$0xf] }
  0x44   :  { %430 = vmatpush.msrb.mxu2 %v407_v54  ;;  %v464_v13 = vunpack.c.l.bf16 %v448_v4 }
  0x45   :  { %374 = vmatpush.msrb.mxu1 %v351_v17  ;;  %491 = vmatpush.msrb.mxu3 %v472_v51 }
  0x46   :  { %431 = vmatpush.msrb.mxu2 %v406_v55  ;;  %v454_v55 = vld [vmem:[#allocation4 + $0x1d0] sm:$0xf] }
  0x47   :  { %375 = vmatpush.msrb.mxu1 %v350_v23  ;;  %492 = vmatpush.msrb.mxu3 %v471_v53  ;;  %v470_v57 = vunpack.c.l.bf16 %v454_v55  ;;  %v504_v53 = vlaneseq  ;;  %v595_v55 = vld [vmem:[#allocation6 + $0x5] ss:$0 sm:$0xff] }
  0x48   :  { %432 = vmatpush.msrb.mxu2 %v405_v63  ;;  %v208_v63 = vperm.slane %v205_v46, 1 }
  0x49   :  { %376 = vmatpush.msrb.mxu1 %v349_v24  ;;  %493 = vmatpush.msrb.mxu3 %v470_v57 }
  0x4a   :  { %433 = vmatpush.msrb.mxu2 %v404_v58  ;;  %v467_v58 = vunpack.c.l.bf16 %v451_v8 }
  0x4b   :  { %377 = vmatpush.msrb.mxu1 %v348_v26  ;;  %494 = vmatpush.msrb.mxu3 %v469_v1 }
  0x4c   :  { %434 = vmatpush.msrb.mxu2 %v403_v0 }
  0x4d   :  { %378 = vmatpush.msrb.mxu1 %v347_v21  ;;  %495 = vmatpush.msrb.mxu3 %v468_v5 }
  0x4e   :  { %435 = vmatpush.msrb.mxu2 %v402_v7 }
  0x4f   :  { %379 = vmatpush.msrb.mxu1 %v346_v22  ;;  %496 = vmatpush.msrb.mxu3 %v467_v58  ;;  %v593_v22 = vld [vmem:[#allocation6 + $0x4] ss:$0 sm:$0xff] }
  0x50   :  { %436 = vmatpush.msrb.mxu2 %v401_v19 }
  0x51   :  { %380 = vmatpush.msrb.mxu1 %v345_v28  ;;  %497 = vmatpush.msrb.mxu3 %v466_v12 }
  0x53   :  { %498 = vmatpush.msrb.mxu3 %v465_v11 }
  0x55   :  { %499 = vmatpush.msrb.mxu3 %v464_v13 }
  0x81   :  { %v106_v25 = vpop.permute.xlu0 %105 }
  0x82   :  { %v823_v31 = vmul.f32 %v106_v25, %v101_v30  ;;  %v594_v25 = vld [vmem:[#allocation6 + $0x3] ss:$0 sm:$0xff] }
  0x84   :  { %247 = vmatmul.f32.vlgmr.msra.gmra.mxu2 %v823_v31  ;;  %287 = vmatmul.f32.vlgmr.msrb.gmra.mxu0 %v823_v31 }
  0x8c   :  { %437 = vmatmul.f32.vlgmr.msrb.gmra.mxu2 %v823_v31 }
  0x94   :  { %v97_v32 = vpop.f32.mrf.mxu0 }
  0x95   :  { %v98_v33 = vadd.f32 %v592_v29, %v97_v32 }
  0x97   :  { %v100_v34 = vmax.f32 %v98_v33, 0.0 }
  0x99   :  { %227 = vmatmul.f32.vlgmr.msra.gmra.mxu1 %v100_v34  ;;  %267 = vmatmul.f32.vlgmr.msra.gmra.mxu3 %v100_v34 }
  0xa1   :  { %381 = vmatmul.f32.vlgmr.msrb.gmra.mxu1 %v100_v34 }
 0x101   :  { %v288_v14 = vpop.f32.mrf.mxu0 }
 0x107   :  { %v248_v59 = vpop.f32.mrf.mxu2 }
 0x10f   :  { %v438_v30 = vpop.f32.mrf.mxu2 }
 0x110   :  { %v439_v36 = vadd.f32 %v593_v22, %v438_v30 }
 0x116   :  { %v228_v54 = vpop.f32.mrf.mxu1 }
 0x117   :  { %v229_v56 = vadd.f32 %v228_v54, %v207_v50  ;;  %v832_v54 = vand.u32 127, %v504_v53 }
 0x119   :  { %v249_v61 = vadd.f32 %v248_v59, %v229_v56  ;;  %vm506_vm9 = vcmp.ge.s32.totalorder %v832_v54, 1  ;;  %vm507_vm10 = vcmp.le.s32.totalorder %v832_v54, 4 }
 0x11a   :  { %vm836_vm11 = vmand %vm506_vm9, %vm507_vm10 }
 0x11b   :  { %v582_v3 = vmul.f32 -1.442695, %v249_v61 }
 0x11c   :  { %v268_v10 = vpop.f32.mrf.mxu3 }
 0x11d   :  { %596 = vpow2.f32 %v582_v3  ;;  %v269_v0 = vadd.f32 %v268_v10, %v208_v63 }
 0x11e   :  { %v382_v33 = vpop.f32.mrf.mxu1 }
 0x11f   :  { %v289_v7 = vadd.f32 %v288_v14, %v269_v0  ;;  %v383_v39 = vadd.f32 %v594_v25, %v382_v33 }
 0x121   :  { %v583_v15 = vmul.f32 -1.442695, %v289_v7 }
 0x123   :  { %v597_v16 = vpop.eup %596  ;;  %598 = vpow2.f32 %v583_v15 }
 0x124   :  { %v297_v17 = vadd.f32 1.0, %v597_v16 }
 0x126   :  { %600 = vrcp.f32 %v297_v17  ;;  %v310_v26 = vand.u32 2147483648, %v297_v17  ;;  %v308_v27 = vand.u32 2147483647, %v297_v17  ;;  %vm304_vm2 = vweird.f32 %v297_v17 }
 0x128   :  { %v311_v34 = vor.u32 1.1754944e-38, %v310_v26  ;;  %vm309_vm4 = vcmp.eq.f32.partialorder %v308_v27, 8.507059e+37 }
 0x129   :  { %v599_v19 = vpop.eup %598 }
 0x12a   :  { %v298_v20 = vadd.f32 1.0, %v599_v19 }
 0x12c   :  { %v601_v23 = vpop.eup %600  ;;  %602 = vrcp.f32 %v298_v20  ;;  %v325_v41 = vand.u32 2147483648, %v298_v20  ;;  %v323_v42 = vand.u32 2147483647, %v298_v20  ;;  %vm319_vm6 = vweird.f32 %v298_v20 }
 0x12d   :  { %v300_v18 = vmul.f32 %v601_v23, %v297_v17  ;;  %vm305_vm1 = vweird.f32 %v601_v23 }
 0x12e   :  { %vm306_vm3 = vmor %vm304_vm2, %vm305_vm1  ;;  %v326_v46 = vor.u32 1.1754944e-38, %v325_v41  ;;  %vm324_vm8 = vcmp.eq.f32.partialorder %v323_v42, 8.507059e+37 }
 0x12f   :  { %v301_v24 = vsub.f32 1.0, %v300_v18 }
 0x131   :  { %v302_v21 = vmul.f32 %v601_v23, %v301_v24 }
 0x132   :  { %v603_v28 = vpop.eup %602 }
 0x133   :  { %v303_v29 = vadd.f32 %v601_v23, %v302_v21  ;;  %v315_v32 = vmul.f32 %v603_v28, %v298_v20  ;;  %vm320_vm5 = vweird.f32 %v603_v28 }
 0x134   :  { %vm321_vm7 = vmor %vm319_vm6, %vm320_vm5  ;;  %vm565_vm5 = vcmp.eq.s32.totalorder %v832_v54, 6  ;;  %vm564_vm6 = vcmp.eq.s32.totalorder %v832_v54, 5 }
 0x135   :  { %v307_v35 = vsel %vm306_vm3, %v601_v23, %v303_v29  ;;  %v316_v37 = vsub.f32 1.0, %v315_v32 }
 0x136   :  { %v312_v38 = vsel %vm309_vm4, %v311_v34, %v307_v35  ;;  %vm566_vm4 = vcmp.eq.s32.totalorder %v832_v54, 7 }
 0x137   :  { %v441_v40 = vmul.f32 %v439_v36, %v312_v38  ;;  %v317_v6 = vmul.f32 %v603_v28, %v316_v37 }
 0x139   :  { %v442_v43 = vadd.f32 %v441_v40, %v383_v39  ;;  %v318_v44 = vadd.f32 %v603_v28, %v317_v6 }
 0x13b   :  { %604 = vtanh.f32 %v442_v43  ;;  %v322_v45 = vsel %vm321_vm7, %v603_v28, %v318_v44  ;;  %vm563_vm7 = vcmp.eq.s32.totalorder %v832_v54, 0 }
 0x13c   :  { %v327_v47 = vsel %vm324_vm8, %v326_v46, %v322_v45 }
 0x13d   :  { %v444_v48 = vsub.f32 1.0, %v327_v47  ;;  %v446_v51 = vmul.f32 %v327_v47, %v823_v31 }
 0x141   :  { %v605_v49 = vpop.eup %604 }
 0x142   :  { %v445_v50 = vmul.f32 %v605_v49, %v444_v48 }
 0x144   :  { %v447_v52 = vadd.f32 %v446_v51, %v445_v50 }
 0x146   :  { %500 = vmatmul.f32.vlgmr.msrb.gmra.mxu3 %v447_v52  ;;  %573 = vst [vmem:[%s870_s5] sm:$0xff] %v447_v52 }
 0x1c9   :  { %v501_v56 = vpop.f32.mrf.mxu3 }
 0x1ca   :  { %v840_v31 = vadd.f32 %v595_v55, %v501_v56 }
 0x1cc   :  { %v509_v59 = vsel %vm836_vm11, %v840_v31, -inf }
 0x1cd   :  { %510 = vmax.xlane.f32.xlu0 %v509_v59 }
 0x240   :  { %v511_v60 = vpop.xlane.xlu0 %510 }
 0x241   :  { %v512_v61 = vsub.f32 %v840_v31, %v511_v60  ;;  %vm541_vm12 = vcmp.eq.f32.partialorder %v840_v31, %v511_v60 }
 0x242   :  { %vm542_vm13 = vmand %vm836_vm11, %vm541_vm12 }
 0x243   :  { %v513_v63 = vmul.f32 1.442695, %v512_v61  ;;  %v543_v1 = vsel %vm542_vm13, %v832_v54, 128 }
 0x244   :  { %v545_v2 = vshra.s32 %v543_v1, 16  ;;  %v544_v9 = vand.u32 65535, %v543_v1 }
 0x245   :  { %606 = vpow2.f32 %v513_v63 }
 0x246   :  { %v547_v3 = vcvt.s32.f32 %v545_v2  ;;  %v546_v58 = vcvt.s32.f32 %v544_v9 }
 0x248   :  { %548 = vmin.xlane.f32.xlu1 %v547_v3 }
 0x24b   :  { %v607_v5 = vpop.eup %606 }
 0x24c   :  { %v515_v8 = vsel %vm836_vm11, %v607_v5, 0.0 }
 0x250   :  { %516 = vadd.xlane.f32.xlu1 %v515_v8 }
 0x2bb   :  { %v549_v10 = vpop.xlane.xlu1 %548 }
 0x2bc   :  { %vm550_vm14 = vcmp.eq.f32.partialorder %v547_v3, %v549_v10  ;;  %v555_v27 = vcvt.f32.s32 %v549_v10 }
 0x2bd   :  { %v551_v62 = vsel %vm550_vm14, %v546_v58, inf }
 0x2be   :  { %552 = vmin.xlane.f32.xlu2 %v551_v62  ;;  %v556_v28 = vshll.u32 %v555_v27, 16 }
 0x2c3   :  { %v517_v0 = vpop.xlane.xlu1 %516 }
 0x2c4   :  { %608 = vrcp.f32 %v517_v0  ;;  %v529_v11 = vand.u32 2147483648, %v517_v0  ;;  %v527_v13 = vand.u32 2147483647, %v517_v0  ;;  %vm523_vm0 = vweird.f32 %v517_v0 }
 0x2c5   :  { %610 = vlog2.f32 %v517_v0 }
 0x2c6   :  { %v530_v19 = vor.u32 1.1754944e-38, %v529_v11  ;;  %vm528_vm2 = vcmp.eq.f32.partialorder %v527_v13, 8.507059e+37 }
 0x2ca   :  { %v609_v12 = vpop.eup %608 }
 0x2cb   :  { %v519_v14 = vmul.f32 %v609_v12, %v517_v0  ;;  %v611_v7 = vpop.eup %610  ;;  %vm524_vm15 = vweird.f32 %v609_v12 }
 0x2cc   :  { %v534_v17 = vmul.f32 0.6931472, %v611_v7  ;;  %vm525_vm1 = vmor %vm523_vm0, %vm524_vm15 }
 0x2cd   :  { %v520_v4 = vsub.f32 1.0, %v519_v14 }
 0x2ce   :  { %v535_v24 = vsub.f32 %v512_v61, %v534_v17 }
 0x2cf   :  { %v521_v15 = vmul.f32 %v609_v12, %v520_v4 }
 0x2d1   :  { %v522_v16 = vadd.f32 %v609_v12, %v521_v15 }
 0x2d3   :  { %v526_v20 = vsel %vm525_vm1, %v609_v12, %v522_v16 }
 0x2d4   :  { %v531_v23 = vsel %vm528_vm2, %v530_v19, %v526_v20 }
 0x2d5   :  { %v532_v18 = vmul.f32 %v531_v23, %v515_v8 }
 0x2d7   :  { %v536_v26 = vmul.f32 %v535_v24, %v532_v18 }
 0x2d9   :  { %v537_v21 = vsel %vm836_vm11, %v536_v26, 0.0 }
 0x2da   :  { %538 = vadd.xlane.f32.xlu2 %v537_v21 }
 0x331   :  { %v553_v22 = vpop.xlane.xlu2 %552 }
 0x332   :  { %v554_v30 = vcvt.f32.s32 %v553_v22 }
 0x334   :  { %v557_v25 = vadd.s32 %v556_v28, %v554_v30 }
 0x336   :  { %vm559_vm3 = vcmp.eq.s32.totalorder %v832_v54, %v557_v25  ;;  %v584_v32 = vadd.s32 4294967295, %v557_v25 }
 0x337   :  { %v560_v29 = vsel %vm559_vm3, %v535_v24, 0.0 }
 0x338   :  { %561 = vadd.xlane.f32.xlu1 %v560_v29  ;;  %v567_v34 = vcvt.s32.f32 %v584_v32 }
 0x33a   :  { %v568_v36 = vsel %vm566_vm4, %v567_v34, 0.0 }
 0x34d   :  { %v539_v33 = vpop.xlane.xlu2 %538 }
 0x34e   :  { %v540_v35 = vsub.f32 0.0, %v539_v33 }
 0x350   :  { %v569_v38 = vsel %vm565_vm5, %v540_v35, %v568_v36 }
 0x3ab   :  { %v562_v37 = vpop.xlane.xlu1 %561 }
 0x3ac   :  { %v570_v39 = vsel %vm564_vm6, %v562_v37, %v569_v38 }
 0x3ad   :  { %v571_v40 = vsel %vm836_vm11, %v532_v18, %v570_v39 }
 0x3ae   :  { %v572_v6 = vsel %vm563_vm7, %v840_v31, %v571_v40 }
 0x3af   :  { %574 = vst [vmem:[%s870_s5 + $0x8] sm:$0xff] %v572_v6 }
 0x3b0   :  { %579 = vsyncpa [#allocation3], 1 }
 0x3b1   :  { %580 = vsyncpa [#allocation5], 1 }

</bundles_post_ra>
